<compile_context>
chip_gen: v7x
topology: tpu7x:2x2x1
jax: 0.10.0
libtpu: 0.0.40
codegen_flags: <defaults>
</compile_context>

<pallas_src>
import math

import jax
import jax.numpy as jnp
from jax.experimental import pallas as pl
from jax.experimental.pallas import tpu as pltpu

_NEG_PAD = -1e30   # logit "bias" for padded class lanes (exp() underflows to 0)


def _round_up(x, m):
    return ((x + m - 1) // m) * m


def _cdiv(a, b):
    return (a + b - 1) // b


def _choose_batch_tile(B):
    """Batch tile: multiple of 16 sublanes (native bf16 tile), <= 1024 rows,
    minimal padding, and >= 2 grid steps when possible (v7x megacore)."""
    TB_MAX = 1024          # double-buffered x+out tiles ~2.3 MiB -> fits every gen
    if B <= 32:
        return _round_up(max(B, 1), 16)
    n_tiles = max(2, _cdiv(B, TB_MAX))   # >= 2 steps so both v7x TCs get work
    return _round_up(_cdiv(B, n_tiles), 16)


# -----------------------------------------------------------------------------
# Pallas kernel: conv as banded MXU matmul + ReLU + Linear (f32) + log_softmax
# -----------------------------------------------------------------------------
def conv_classifier_kernel(bconv_ref, x_ref, band_ref, w2_ref, b2_ref, o_ref):
    # --- Conv1d(1,1,K,S): one bf16 MXU pass against the resident banded matrix
    # x (TB, Fp) bf16 @ band (Fp, Lp) bf16 -> f32 accumulation.
    h = jnp.dot(x_ref[...], band_ref[...], preferred_element_type=jnp.float32)
    # + conv bias (SMEM scalar), ReLU -- all f32.  Padded hidden lanes become
    # relu(bias); they are killed by the exactly-zero padded rows of W2 below.
    h = jnp.maximum(h + bconv_ref[0], 0.0)

    # --- Linear(hidden, out): f32 MXU (kernel is HBM-bound, f32 here is free) --
    logits = jnp.dot(h, w2_ref[...], preferred_element_type=jnp.float32)
    logits = logits + b2_ref[...]          # padded class lanes get -1e30 (f32 add)

    # --- log_softmax over the lane-dense (padded) class axis ------------------
    m = jnp.max(logits, axis=-1, keepdims=True)
    s = logits - m
    lse = jnp.log(jnp.sum(jnp.exp(s), axis=-1, keepdims=True))
    o_ref[...] = s - lse                   # lane-dense (TB, 128) f32 store


# -----------------------------------------------------------------------------
# Wrapper / parameter setup (glue in plain JAX)
# -----------------------------------------------------------------------------
class ConvClassifierPallas:
    def __init__(self, inFeatures, outFeatures, kernel_size=5, stride=5,
                 padding=0, dilation=1, key=None):
        self.inFeatures = inFeatures
        self.outFeatures = outFeatures
        self.kernel_size = kernel_size
        self.stride = stride

        # hidden_size formula copied verbatim from the PyTorch module
        if (inFeatures + 2 * padding - dilation * (kernel_size - 1)) % stride == 0:
            self.hidden_size = int(
                (inFeatures + 2 * padding - dilation * (kernel_size - 1)) / stride)
        else:
            self.hidden_size = math.floor(
                (inFeatures + 2 * padding - dilation * (kernel_size - 1)) / stride) + 1

        # Actual Conv1d output length (nn.Conv1d is constructed with padding=0,
        # dilation=1 in the PyTorch module, regardless of the ctor args).
        conv_out = (inFeatures - (kernel_size - 1) - 1) // stride + 1
        assert conv_out == self.hidden_size, "hidden_size mismatch with conv output"

        if key is None:
            key = jax.random.PRNGKey(0)
        k1, k2, k3, k4 = jax.random.split(key, 4)

        # Deterministic init mimicking PyTorch's default uniform(-bound, bound)
        bc = 1.0 / math.sqrt(1 * kernel_size)                        # Conv1d fan_in
        self.conv_w = jax.random.uniform(k1, (kernel_size,), jnp.float32, -bc, bc)
        self.conv_b = jax.random.uniform(k2, (1,), jnp.float32, -bc, bc)

        bl = 1.0 / math.sqrt(self.hidden_size)                       # Linear fan_in
        self.lin_w = jax.random.uniform(
            k3, (outFeatures, self.hidden_size), jnp.float32, -bl, bl)
        self.lin_b = jax.random.uniform(k4, (outFeatures,), jnp.float32, -bl, bl)

        # Lane-dense padded dims, kept at 128 (padding to 256 would only add
        # useless bytes on an HBM-bound kernel).
        L, K, S = self.hidden_size, kernel_size, stride
        self.Fp = _round_up(inFeatures, 128)
        self.Lp = _round_up(L, 128)
        self.OUTp = _round_up(outFeatures, 128)

        # Banded conv matrix (Fp, Lp): column l carries conv_w[k] at row l*S + k.
        # Grid-resident (DMA'd once), bf16 for a native MXU pass against bf16 x.
        rows = (jnp.arange(L)[:, None] * S + jnp.arange(K)[None, :]).reshape(-1)
        cols = jnp.repeat(jnp.arange(L), K)
        band = jnp.zeros((inFeatures, L), jnp.float32).at[rows, cols].set(
            jnp.tile(self.conv_w, (L,)))
        self.conv_band = jnp.pad(
            band, ((0, self.Fp - inFeatures), (0, self.Lp - L))).astype(jnp.bfloat16)

        # Linear weight: (hidden, out) -> zero-pad to (Lp, OUTp), f32 (resident,
        # tiny; f32 keeps parity with the PyTorch module).  INVARIANT: padded
        # hidden rows must stay exactly zero -- they absorb relu(conv_bias) that
        # lands on the padded hidden lanes of h.
        self.w2_pad = jnp.pad(self.lin_w.T.astype(jnp.float32),
                              ((0, self.Lp - L), (0, self.OUTp - outFeatures)))
        # Bias: -1e30 on padded class lanes so they vanish inside log_softmax
        # (must stay an f32 add in the kernel).
        self.b2_pad = jnp.pad(self.lin_b.reshape(1, -1),
                              ((0, 0), (0, self.OUTp - outFeatures)),
                              constant_values=_NEG_PAD).astype(jnp.float32)

    def __call__(self, x):
        # x: (B, 1, inFeatures) -> squeeze channel -> (B, inFeatures)
        B = x.shape[0]
        x2d = x.reshape(B, self.inFeatures)

        TB = _choose_batch_tile(B)
        B_pad = _round_up(B, TB)
        grid = (B_pad // TB,)

        # Stream x directly: pad batch + feature lanes, cast to bf16 (halves the
        # dominant HBM read; all in-kernel math stays f32 after the load).
        xp = jnp.pad(x2d.astype(jnp.float32),
                     ((0, B_pad - B), (0, self.Fp - self.inFeatures)))
        xp = xp.astype(jnp.bfloat16)

        # VMEM budget: double-buffered streamed tiles + residents (counted twice,
        # conservatively), 2x headroom, clamped to [4, 32] MiB.
        bytes_in = TB * self.Fp * 2                      # x tile (bf16)
        bytes_out = TB * self.OUTp * 4                   # output tile (f32)
        resident = (self.Fp * self.Lp * 2                # banded conv matrix (bf16)
                    + self.Lp * self.OUTp * 4            # W2 (f32)
                    + 8 * self.OUTp * 4)                 # b2 (one sublane tile)
        vmem_bytes = 2 * (bytes_in + bytes_out) + 2 * resident
        vmem_limit = int(min(32 << 20, max(4 << 20, 2 * vmem_bytes)))

        # NOTE: if hidden_size ever grows to O(10k), tile the Lp contraction axis
        # (reduction grid axis + f32 accumulator scratch) so the resident blocks
        # fit v7x's 64 MiB VMEM; at Lp=128 everything is resident and this is moot.
        out = pl.pallas_call(
            conv_classifier_kernel,
            out_shape=jax.ShapeDtypeStruct((B_pad, self.OUTp), jnp.float32),
            grid=grid,
            in_specs=[
                pl.BlockSpec(memory_space=pltpu.MemorySpace.SMEM),       # conv_b (1,)
                pl.BlockSpec((TB, self.Fp), lambda i: (i, 0)),           # x stream
                pl.BlockSpec((self.Fp, self.Lp), lambda i: (0, 0)),      # banded conv
                pl.BlockSpec((self.Lp, self.OUTp), lambda i: (0, 0)),    # W2 resident
                pl.BlockSpec((1, self.OUTp), lambda i: (0, 0)),          # b2 resident
            ],
            out_specs=pl.BlockSpec((TB, self.OUTp), lambda i: (i, 0)),
            compiler_params=pltpu.CompilerParams(
                dimension_semantics=("parallel",),    # batch axis -> both TCs on v7x
                vmem_limit_bytes=vmem_limit),
        )(self.conv_b, xp, self.conv_band, self.w2_pad, self.b2_pad)

        return out[:B, :self.outFeatures]


# -----------------------------------------------------------------------------
# Pure-JAX f32 reference for sanity checking
# -----------------------------------------------------------------------------
def reference_forward(model, x):
    B = x.shape[0]
    x2d = x.reshape(B, model.inFeatures).astype(jnp.float32)
    L, K, S = model.hidden_size, model.kernel_size, model.stride
    windows = jnp.stack([x2d[:, l * S: l * S + K] for l in range(L)], axis=1)  # (B,L,K)
    h = jnp.einsum("blk,k->bl", windows, model.conv_w) + model.conv_b[0]
    h = jnp.maximum(h, 0.0)
    logits = h @ model.lin_w.T + model.lin_b
    return jax.nn.log_softmax(logits, axis=-1)


if __name__ == "__main__":
    B, IN_FEATURES, OUT_FEATURES = 2, 80, 8    # hidden_size = 16

    key = jax.random.PRNGKey(0)
    kx, kp = jax.random.split(key)
    x = jax.random.normal(kx, (B, 1, IN_FEATURES), jnp.float32)

    model = ConvClassifierPallas(IN_FEATURES, OUT_FEATURES, key=kp)

    out = jax.block_until_ready(model(x))

    ref = reference_forward(model, x)
    assert out.shape == (B, OUT_FEATURES)
    # bf16 x / banded-conv operands trade ~1e-3 abs error vs the f32 reference;
    # all other math (bias, Linear, log_softmax) is f32.
    assert bool(jnp.allclose(out, ref, atol=2e-2, rtol=0)), "mismatch vs reference"

    print("KERNEL_OK")
</pallas_src>

<mosaic_0001>
module attributes {stable_mosaic.version = 11 : i64} {
  func.func @conv_classifier_kernel(%arg0: i32, %arg1: memref<1xf32, #tpu.memory_space<smem>>, %arg2: memref<16x128xbf16, #tpu.memory_space<vmem>>, %arg3: memref<128x128xbf16, #tpu.memory_space<vmem>>, %arg4: memref<128x128xf32, #tpu.memory_space<vmem>>, %arg5: memref<1x128xf32, #tpu.memory_space<vmem>>, %arg6: memref<16x128xf32, #tpu.memory_space<vmem>>) attributes {dimension_semantics = [#tpu.dimension_semantics<parallel>], iteration_bounds = array<i64: 1>, scalar_prefetch = 0 : i64, scratch_operands = 0 : i64, tpu.core_type = #tpu.core_type<tc>, window_params = [{transform_indices = @transform_0, window_bounds = array<i64: 1>}, {transform_indices = @transform_1, window_bounds = array<i64: 16, 128>}, {pipeline_mode = #tpu.pipeline_mode<synchronous>, transform_indices = @transform_2, window_bounds = array<i64: 128, 128>}, {pipeline_mode = #tpu.pipeline_mode<synchronous>, transform_indices = @transform_3, window_bounds = array<i64: 128, 128>}, {pipeline_mode = #tpu.pipeline_mode<synchronous>, transform_indices = @transform_4, window_bounds = array<i64: 1, 128>}, {transform_indices = @transform_5, window_bounds = array<i64: 16, 128>}]} {
    %c0 = arith.constant 0 : index
    %c0_0 = arith.constant 0 : index
    %0 = vector.load %arg2[%c0, %c0_0] : memref<16x128xbf16, #tpu.memory_space<vmem>>, vector<16x128xbf16>
    %c0_1 = arith.constant 0 : index
    %c0_2 = arith.constant 0 : index
    %1 = vector.load %arg3[%c0_1, %c0_2] : memref<128x128xbf16, #tpu.memory_space<vmem>>, vector<128x128xbf16>
    %cst = arith.constant dense<0.000000e+00> : vector<16x128xf32>
    %2 = tpu.matmul %0, %1, %cst {dimension_numbers = #tpu.dot_dimension_numbers<[1], [0], [0], [1], [0, 0, 1, 1], [], []>} : vector<16x128xbf16>, vector<128x128xbf16>, vector<16x128xf32> -> vector<16x128xf32>
    %c0_3 = arith.constant 0 : index
    %3 = memref.load %arg1[%c0_3] : memref<1xf32, #tpu.memory_space<smem>>
    %4 = vector.broadcast %3 : f32 to vector<16x128xf32>
    %5 = arith.addf %2, %4 : vector<16x128xf32>
    %cst_4 = arith.constant 0.000000e+00 : f32
    %6 = vector.broadcast %cst_4 : f32 to vector<16x128xf32>
    %7 = arith.maximumf %5, %6 : vector<16x128xf32>
    %c0_5 = arith.constant 0 : index
    %c0_6 = arith.constant 0 : index
    %8 = vector.load %arg4[%c0_5, %c0_6] : memref<128x128xf32, #tpu.memory_space<vmem>>, vector<128x128xf32>
    %cst_7 = arith.constant dense<0.000000e+00> : vector<16x128xf32>
    %9 = tpu.matmul %7, %8, %cst_7 {dimension_numbers = #tpu.dot_dimension_numbers<[1], [0], [0], [1], [0, 0, 1, 1], [], []>} : vector<16x128xf32>, vector<128x128xf32>, vector<16x128xf32> -> vector<16x128xf32>
    %c0_8 = arith.constant 0 : index
    %c0_9 = arith.constant 0 : index
    %10 = vector.load %arg5[%c0_8, %c0_9] : memref<1x128xf32, #tpu.memory_space<vmem>>, vector<1x128xf32>
    %11 = vector.broadcast %10 : vector<1x128xf32> to vector<16x128xf32>
    %12 = arith.addf %9, %11 : vector<16x128xf32>
    %cst_10 = arith.constant dense<0xFF800000> : vector<16xf32>
    %13 = vector.multi_reduction <maximumf>, %12, %cst_10 [1] : vector<16x128xf32> to vector<16xf32>
    %14 = vector.shape_cast %13 : vector<16xf32> to vector<16x1xf32>
    %15 = vector.broadcast %14 : vector<16x1xf32> to vector<16x128xf32>
    %16 = arith.subf %12, %15 : vector<16x128xf32>
    %17 = math.exp %16 : vector<16x128xf32>
    %cst_11 = arith.constant dense<0.000000e+00> : vector<16xf32>
    %18 = vector.multi_reduction <add>, %17, %cst_11 [1] : vector<16x128xf32> to vector<16xf32>
    %19 = vector.shape_cast %18 : vector<16xf32> to vector<16x1xf32>
    %20 = math.log %19 : vector<16x1xf32>
    %21 = vector.broadcast %20 : vector<16x1xf32> to vector<16x128xf32>
    %22 = arith.subf %16, %21 : vector<16x128xf32>
    %c0_12 = arith.constant 0 : index
    %c0_13 = arith.constant 0 : index
    %23 = vector.load %arg6[%c0_12, %c0_13] : memref<16x128xf32, #tpu.memory_space<vmem>>, vector<16x128xf32>
    tpu.vector_store %arg6[%c0_12, %c0_13], %22 {strides = array<i32>} : memref<16x128xf32, #tpu.memory_space<vmem>>, vector<16x128xf32>,
    return
  }
  func.func @transform_0(%arg0: i32) -> i32 {
    %c0_i32 = arith.constant 0 : i32
    %c0_i32_0 = arith.constant 0 : i32
    return %c0_i32 : i32
  }
  func.func @transform_1(%arg0: i32) -> (i32, i32) {
    %c0_i32 = arith.constant 0 : i32
    %c0_i32_0 = arith.constant 0 : i32
    return %arg0, %c0_i32 : i32, i32
  }
  func.func @transform_2(%arg0: i32) -> (i32, i32) {
    %c0_i32 = arith.constant 0 : i32
    %c0_i32_0 = arith.constant 0 : i32
    %c0_i32_1 = arith.constant 0 : i32
    return %c0_i32, %c0_i32_0 : i32, i32
  }
  func.func @transform_3(%arg0: i32) -> (i32, i32) {
    %c0_i32 = arith.constant 0 : i32
    %c0_i32_0 = arith.constant 0 : i32
    %c0_i32_1 = arith.constant 0 : i32
    return %c0_i32, %c0_i32_0 : i32, i32
  }
  func.func @transform_4(%arg0: i32) -> (i32, i32) {
    %c0_i32 = arith.constant 0 : i32
    %c0_i32_0 = arith.constant 0 : i32
    %c0_i32_1 = arith.constant 0 : i32
    return %c0_i32, %c0_i32_0 : i32, i32
  }
  func.func @transform_5(%arg0: i32) -> (i32, i32) {
    %c0_i32 = arith.constant 0 : i32
    %c0_i32_0 = arith.constant 0 : i32
    return %arg0, %c0_i32 : i32, i32
  }
}

</mosaic_0001>

<bundles_post_ra>
// kernel: tpu_custom_call.1
= control target key start
LH: loop header
LB: loop body
LE: loop exit
PB: predicated region body
PF: predicated region fallthrough
CT: control target
= control target key end

     0   :  { %11 = vsyncpa [#allocation4], 0  ;;  %s671_s0 = inlined_call_operand.<no memory space> [shape: f32[1], index: 0, kind: input, shape index: {}]   ;;  %s672_s1 = inlined_call_operand.hbm [shape: bf16[16,128], index: 1, kind: input, shape index: {}]   ;;  %s673_s2 = inlined_call_operand.hbm [shape: bf16[128,128], index: 2, kind: input, shape index: {}]   ;;  %s674_s3 = inlined_call_operand.hbm [shape: f32[128,128], index: 3, kind: input, shape index: {}]   ;;  %s675_s4 = inlined_call_operand.vmem [shape: f32[1,128], index: 4, kind: input, shape index: {}]   ;;  %s676_s5 = inlined_call_operand.hbm [shape: f32[16,128], index: 5, kind: output, shape index: {}]  }
   0x1   :  { %12 = vsyncpa [#allocation7], 0 }
   0x2   :  { %13 = vsyncpa [#allocation5], 0  ;;  %s564_s18 = smov [#allocation6]   ;;  %s565_s20 = smov [#allocation3]  }
   0x3   :  { %s33_s19 = sshll.u32 %s564_s18, 4  ;;  %s21_s21 = sshll.u32 %s565_s20, 4  ;;  %s34_s19 = int_to_ptr.vmem [resolvable:$true] %s33_s19  ;;  %s604_s21 = int_to_ptr.vmem [resolvable:$true] %s21_s21 }
   0x4   :  { %s470_s24 = scalar_lea.hbm %s673_s2, 1024 }
   0x5   :  { %p471_p0 = scmp.ne.s32.totalorder %s673_s2, %s470_s24  ;;  %p474_p1 = scmp.lt.u32.totalorder %s470_s24, %s673_s2 }
   0x7   :  { %p476_p2 = pnand %p474_p1, %p471_p0 }
   0x9   :  { %479 = shalt.err (!%p476_p2)
}
   0xa   :  { %s480_s29 = scalar_lea.vmem %s34_s19, 1024  ;;  %p485_p4 = scmp.lt.s32.totalorder %s34_s19, %s34_s19 }
   0xb   :  { %p481_p3 = scmp.ne.s32.totalorder %s34_s19, %s480_s29  ;;  %p486_p5 = scmp.lt.s32.totalorder %s480_s29, %s480_s29 }
   0xd   :  { %p487_p6 = por %p486_p5, %p485_p4 }
   0xf   :  { %p488_p7 = pnand %p487_p6, %p481_p3 }
  0x11   :  { %491 = shalt.err (!%p488_p7)
}
  0x12   :  { %s566_s30 = smov 64   ;;  %s567_s6 = smov 4  }
  0x13   :  { %39 = dma.hbm_to_vmem [thread:$0]  %s673_s2, 1024, %s34_s19, [#allocation7], %s566_s30, %s566_s30, %s567_s6  }
  0x14   :  { %s492_s11 = scalar_lea.hbm %s672_s1, 128 }
  0x15   :  { %p493_p8 = scmp.ne.s32.totalorder %s672_s1, %s492_s11  ;;  %p496_p9 = scmp.lt.u32.totalorder %s492_s11, %s672_s1 }
  0x17   :  { %p498_p10 = pnand %p496_p9, %p493_p8 }
  0x19   :  { %501 = shalt.err (!%p498_p10)
}
  0x1a   :  { %s502_s16 = scalar_lea.vmem %s604_s21, 128  ;;  %p507_p12 = scmp.lt.s32.totalorder %s604_s21, %s604_s21 }
  0x1b   :  { %p503_p11 = scmp.ne.s32.totalorder %s604_s21, %s502_s16  ;;  %p508_p13 = scmp.lt.s32.totalorder %s502_s16, %s502_s16 }
  0x1d   :  { %p509_p0 = por %p508_p13, %p507_p12 }
  0x1f   :  { %p510_p1 = pnand %p509_p0, %p503_p11 }
  0x21   :  { %513 = shalt.err (!%p510_p1)
}
  0x22   :  { %27 = dma.hbm_to_vmem [thread:$0]  %s672_s1, 128, %s604_s21, [#allocation4], %s566_s30, %s566_s30, %s567_s6  }
  0x23   :  { %s568_s18 = smov [#allocation8]   ;;  %s514_s23 = scalar_lea.hbm %s674_s3, 2048 }
  0x24   :  { %s45_s19 = sshll.u32 %s568_s18, 4  ;;  %p515_p2 = scmp.ne.s32.totalorder %s674_s3, %s514_s23  ;;  %s46_s19 = int_to_ptr.vmem [resolvable:$true] %s45_s19 }
  0x25   :  { %p518_p3 = scmp.lt.u32.totalorder %s514_s23, %s674_s3 }
  0x27   :  { %p520_p4 = pnand %p518_p3, %p515_p2 }
  0x29   :  { %523 = shalt.err (!%p520_p4)
}
  0x2a   :  { %s524_s28 = scalar_lea.vmem %s46_s19, 2048  ;;  %p529_p6 = scmp.lt.s32.totalorder %s46_s19, %s46_s19 }
  0x2b   :  { %p525_p5 = scmp.ne.s32.totalorder %s46_s19, %s524_s28  ;;  %p530_p7 = scmp.lt.s32.totalorder %s524_s28, %s524_s28 }
  0x2d   :  { %p531_p8 = por %p530_p7, %p529_p6 }
  0x2f   :  { %p532_p9 = pnand %p531_p8, %p525_p5 }
  0x31   :  { %535 = shalt.err (!%p532_p9)
}
  0x32   :  { %s569_s1 = smov 128   ;;  %s570_s21 = smov 8  }
  0x33   :  { %51 = dma.hbm_to_vmem [thread:$0]  %s674_s3, 2048, %s46_s19, [#allocation7], %s569_s1, %s569_s1, %s570_s21  }
  0x34   :  { %558 = dma.done.wait [#allocation4], 128  }
  0x35   :  { %559 = vsyncadd [#allocation4], 4294967168 }
  0x36   :  { %560 = dma.done.wait [#allocation7], 3072  }
  0x37   :  { %561 = vsyncadd [#allocation7], 4294964224  ;;  %v571_v0 = vmov 0.0   ;;  %vm572_vm0 = vmmov 0   ;;  %v453_v1 = vld [vmem:[#allocation6] sm:$0xff]   ;;  %v454_v2 = vld [vmem:[#allocation6 + $0x8] sm:$0xff]   ;;  %v83_v34 = vstv %s671_s0 }
  0x38   :  { %356 = vmatprep.subr.bf16.mxu0 %v571_v0  ;;  %372 = vmatprep.mubr.msk.bf16.mxu0 %vm572_vm0, %v571_v0  ;;  %v455_v3 = vld [vmem:[#allocation6 + $0x10] sm:$0xff]   ;;  %v181_v4 = vld [vmem:[#allocation8] sm:$0xff]  ;;  %v182_v5 = vld [vmem:[#allocation8 + $0x8] sm:$0xff]  ;;  %s573_s0 = smov [#allocation9]  }
  0x39   :  { %357 = vmatpush3.bf16.msra.mxu0 %v453_v1  ;;  %v183_v6 = vld [vmem:[#allocation8 + $0x10] sm:$0xff]  ;;  %v456_v7 = vld [vmem:[#allocation6 + $0x18] sm:$0xff]   ;;  %v411_v8 = vpack.c.bf16 %v182_v5, %v181_v4  ;;  %v185_v11 = vld [vmem:[#allocation8 + $0x20] sm:$0xff] }
  0x3a   :  { %358 = vmatprep.subr.bf16.mxu0 %v571_v0  ;;  %v184_v9 = vld [vmem:[#allocation8 + $0x18] sm:$0xff]  ;;  %v186_v12 = vld [vmem:[#allocation8 + $0x28] sm:$0xff]  ;;  %v457_v13 = vld [vmem:[#allocation6 + $0x20] sm:$0xff]  }
  0x3b   :  { %v415_v10 = vpack.c.bf16 %v184_v9, %v183_v6  ;;  %412 = vmatprep.subr.bf16.mxu1 %v411_v8  ;;  %v419_v14 = vpack.c.bf16 %v186_v12, %v185_v11  ;;  %v187_v15 = vld [vmem:[#allocation8 + $0x30] sm:$0xff]  ;;  %v188_v16 = vld [vmem:[#allocation8 + $0x38] sm:$0xff]  ;;  %v458_v17 = vld [vmem:[#allocation6 + $0x28] sm:$0xff]  }
  0x3c   :  { %414 = vmatpush3.bf16.msra.mxu1 %v411_v8  ;;  %v423_v18 = vpack.c.bf16 %v188_v16, %v187_v15  ;;  %v189_v19 = vld [vmem:[#allocation8 + $0x40] sm:$0xff]  ;;  %v190_v20 = vld [vmem:[#allocation8 + $0x48] sm:$0xff]  ;;  %v459_v21 = vld [vmem:[#allocation6 + $0x30] sm:$0xff]  }
  0x3d   :  { %359 = vmatpush3.bf16.msra.mxu0 %v454_v2  ;;  %416 = vmatprep.subr.bf16.mxu1 %v415_v10  ;;  %v427_v22 = vpack.c.bf16 %v190_v20, %v189_v19  ;;  %v191_v23 = vld [vmem:[#allocation8 + $0x50] sm:$0xff]  ;;  %v192_v24 = vld [vmem:[#allocation8 + $0x58] sm:$0xff]  ;;  %v193_v27 = vld [vmem:[#allocation8 + $0x60] sm:$0xff] }
  0x3e   :  { %360 = vmatprep.subr.bf16.mxu0 %v571_v0  ;;  %v460_v25 = vld [vmem:[#allocation6 + $0x38] sm:$0xff]   ;;  %v431_v26 = vpack.c.bf16 %v192_v24, %v191_v23  ;;  %v194_v28 = vld [vmem:[#allocation8 + $0x68] sm:$0xff]  ;;  %v195_v31 = vld [vmem:[#allocation8 + $0x70] sm:$0xff] }
  0x3f   :  { %v461_v29 = vld [vmem:[#allocation3] sm:$0xff]   ;;  %v435_v30 = vpack.c.bf16 %v194_v28, %v193_v27 }
  0x40   :  { %418 = vmatpush3.bf16.msra.mxu1 %v415_v10  ;;  %v196_v32 = vld [vmem:[#allocation8 + $0x78] sm:$0xff] }
  0x41   :  { %361 = vmatpush3.bf16.msra.mxu0 %v455_v3  ;;  %420 = vmatprep.subr.bf16.mxu1 %v419_v14  ;;  %v439_v33 = vpack.c.bf16 %v196_v32, %v195_v31  ;;  %v328_v43 = vld [vmem:[%s675_s4] ss:$0 sm:$0xff]  ;;  %s306_s4 = sshll.u32 %s573_s0, 4  ;;  %s307_s4 = int_to_ptr.vmem [resolvable:$true] %s306_s4 }
  0x42   :  { %362 = vmatprep.subr.bf16.mxu0 %v571_v0  ;;  %s536_s9 = scalar_lea.vmem %s307_s4, 256  ;;  %p541_p11 = scmp.lt.s32.totalorder %s307_s4, %s307_s4 }
  0x43   :  { %p537_p10 = scmp.ne.s32.totalorder %s307_s4, %s536_s9  ;;  %p542_p12 = scmp.lt.s32.totalorder %s536_s9, %s536_s9 }
  0x44   :  { %422 = vmatpush3.bf16.msra.mxu1 %v419_v14 }
  0x45   :  { %363 = vmatpush3.bf16.msra.mxu0 %v456_v7  ;;  %424 = vmatprep.subr.bf16.mxu1 %v423_v18  ;;  %p543_p13 = por %p542_p12, %p541_p11 }
  0x46   :  { %364 = vmatprep.subr.bf16.mxu0 %v571_v0 }
  0x47   :  { %p544_p0 = pnand %p543_p13, %p537_p10 }
  0x48   :  { %426 = vmatpush3.bf16.msra.mxu1 %v423_v18 }
  0x49   :  { %365 = vmatpush3.bf16.msra.mxu0 %v457_v13  ;;  %428 = vmatprep.subr.bf16.mxu1 %v427_v22 }
  0x4a   :  { %366 = vmatprep.subr.bf16.mxu0 %v571_v0 }
  0x4c   :  { %430 = vmatpush3.bf16.msra.mxu1 %v427_v22 }
  0x4d   :  { %367 = vmatpush3.bf16.msra.mxu0 %v458_v17  ;;  %432 = vmatprep.subr.bf16.mxu1 %v431_v26 }
  0x4e   :  { %368 = vmatprep.subr.bf16.mxu0 %v571_v0 }
  0x50   :  { %434 = vmatpush3.bf16.msra.mxu1 %v431_v26 }
  0x51   :  { %369 = vmatpush3.bf16.msra.mxu0 %v459_v21  ;;  %436 = vmatprep.subr.bf16.mxu1 %v435_v30 }
  0x52   :  { %370 = vmatprep.subr.bf16.mxu0 %v571_v0 }
  0x54   :  { %438 = vmatpush3.bf16.msra.mxu1 %v435_v30 }
  0x55   :  { %371 = vmatpush3.bf16.msra.mxu0 %v460_v25  ;;  %440 = vmatprep.subr.bf16.mxu1 %v439_v33 }
  0x58   :  { %373 = vmatmul.mubr.bf16.vlgmr.msra.gmra.mrb[0].mxu0 %v461_v29  ;;  %442 = vmatpush3.bf16.msra.mxu1 %v439_v33 }
 0x12b   :  { %v172_v35 = vpop.f32.mrb[0].mxu0 }
 0x12c   :  { %v374_v36 = vpop.f32.mrb[1].mxu0  ;;  %v173_v37 = vadd.f32 %v172_v35, %v83_v34 }
 0x12d   :  { %v175_v38 = vpop.f32.mrb[2].mxu0 }
 0x12e   :  { %v176_v39 = vadd.f32 %v175_v38, %v83_v34  ;;  %v375_v40 = vpop.f32.mrb[3].mxu0  ;;  %v179_v41 = vmax.f32 %v173_v37, 0.0 }
 0x130   :  { %v180_v42 = vmax.f32 %v176_v39, 0.0  ;;  %408 = vmatprep.mubr.f32.mxu1 %v179_v41 }
 0x132   :  { %409 = vmatmul.mubr.f32.vlgmr.msra.gmra.mrb[0].mxu1 %v180_v42 }
 0x205   :  { %v410_v44 = vpop.f32.mrb[0].mxu1 }
 0x206   :  { %v270_v45 = vpop.f32.mrb[1].mxu1  ;;  %v276_v47 = vadd.f32 %v410_v44, %v328_v43 }
 0x207   :  { %v271_v46 = vadd.f32 %v328_v43, %v270_v45 }
 0x209   :  { %279 = vmax.xlane.f32.xlu0 %v271_v46 }
 0x20d   :  { %281 = vmax.xlane.f32.xlu0 %v276_v47 }
 0x296   :  { %v280_v48 = vpop.xlane.xlu0 %279 }
 0x297   :  { %v283_v49 = vsub.f32 %v271_v46, %v280_v48 }
 0x299   :  { %v285_v50 = vmul.f32 1.442695, %v283_v49 }
 0x29a   :  { %v282_v51 = vpop.xlane.xlu0 %281 }
 0x29b   :  { %v284_v52 = vsub.f32 %v276_v47, %v282_v51  ;;  %462 = vpow2.f32 %v285_v50 }
 0x29d   :  { %v287_v53 = vmul.f32 1.442695, %v284_v52 }
 0x29f   :  { %464 = vpow2.f32 %v287_v53 }
 0x2a5   :  { %v463_v54 = vpop.eup %462 }
 0x2a6   :  { %289 = vadd.xlane.f32.xlu1 %v463_v54 }
 0x2a9   :  { %v465_v55 = vpop.eup %464 }
 0x2aa   :  { %291 = vadd.xlane.f32.xlu1 %v465_v55 }
 0x333   :  { %v290_v56 = vpop.xlane.xlu1 %289 }
 0x334   :  { %466 = vlog2.f32 %v290_v56 }
 0x337   :  { %v292_v57 = vpop.xlane.xlu1 %291 }
 0x338   :  { %468 = vlog2.f32 %v292_v57 }
 0x33e   :  { %v467_v58 = vpop.eup %466 }
 0x33f   :  { %v294_v59 = vmul.f32 0.6931472, %v467_v58 }
 0x341   :  { %v297_v60 = vsub.f32 %v283_v49, %v294_v59 }
 0x342   :  { %v469_v61 = vpop.eup %468 }
 0x343   :  { %299 = vst [vmem:[#allocation9] sm:$0xff] %v297_v60  ;;  %v296_v62 = vmul.f32 0.6931472, %v469_v61 }
 0x345   :  { %v298_v63 = vsub.f32 %v284_v52, %v296_v62 }
 0x347   :  { %300 = vst [vmem:[#allocation9 + $0x8] sm:$0xff] %v298_v63 }
 0x348   :  { %547 = shalt.err (!%p544_p0)
}
 0x349   :  { %s548_s12 = scalar_lea.hbm %s676_s5, 256 }
 0x34a   :  { %p549_p1 = scmp.ne.s32.totalorder %s676_s5, %s548_s12  ;;  %p552_p2 = scmp.lt.u32.totalorder %s548_s12, %s676_s5 }
 0x34c   :  { %p554_p3 = pnand %p552_p2, %p549_p1 }
 0x34e   :  { %557 = shalt.err (!%p554_p3)
}
 0x34f   :  { %312 = dma.vmem_to_hbm [thread:$0]  %s307_s4, 256, %s676_s5, [#allocation5], %s569_s1, %s569_s1, %s570_s21  }
 0x350   :  { %562 = dma.done.wait [#allocation5], 256  }
 0x351   :  { %563 = vsyncadd [#allocation5], 4294967040 }
 0x352   :  { %316 = vsyncpa [#allocation4], 1 }
 0x353   :  { %317 = vsyncpa [#allocation7], 1 }
 0x354   :  { %318 = vsyncpa [#allocation5], 1 }

</bundles_post_ra>
